<compile_context>
chip_gen: v7x
topology: tpu7x:2x2x1
jax: 0.10.0
libtpu: 0.0.40
codegen_flags: <defaults>
</compile_context>

<pallas_src>
import jax
import jax.numpy as jnp
from jax import lax
from jax.experimental import pallas as pl
from jax.experimental.pallas import tpu as pltpu

_EPS = 1e-5


def _make_kernel(c, with_bias, eps=_EPS):
    """LayerNorm-over-sublanes kernel for tiles of shape (C, TN): normalize axis 0."""
    inv_c = 1.0 / float(c)

    if with_bias:
        def kernel(x_ref, w_ref, b_ref, o_ref):
            x = x_ref[...].astype(jnp.float32)                     # (C, TN)
            mu = jnp.sum(x, axis=0, keepdims=True) * inv_c         # (1, TN)
            xc = x - mu
            var = jnp.sum(xc * xc, axis=0, keepdims=True) * inv_c  # two-pass, f32
            inv = lax.rsqrt(var + eps)                             # EUP slot
            w = w_ref[...].astype(jnp.float32)                     # (C, 1)
            b = b_ref[...].astype(jnp.float32)                     # (C, 1)
            o_ref[...] = (xc * inv * w + b).astype(o_ref.dtype)
    else:
        def kernel(x_ref, w_ref, o_ref):
            x = x_ref[...].astype(jnp.float32)
            mu = jnp.sum(x, axis=0, keepdims=True) * inv_c
            xc = x - mu
            var = jnp.sum(xc * xc, axis=0, keepdims=True) * inv_c
            inv = lax.rsqrt(var + eps)
            w = w_ref[...].astype(jnp.float32)
            # BiasFree: x is NOT mean-centered; mu only feeds the variance.
            o_ref[...] = (x * inv * w).astype(o_ref.dtype)

    return kernel


def _pick_tile_n(n, c, itemsize, b, target_bytes=2 << 20):
    """Lane-tile width over H*W: ~2 MiB input tile (real itemsize), multiple of 128
    or the full extent, capped so the grid has >= ~4 total steps (v7x: 2 TCs x 2)."""
    if n <= 256:
        return n                                     # full extent is always a legal block dim
    t = (target_bytes // max(1, c * itemsize)) // 128 * 128
    min_steps = max(2, -(-4 // b))                   # ceil(4 / b), at least 2 along H*W
    cap = (n // min_steps) // 128 * 128
    if cap >= 128:
        t = min(t, cap)
    t = max(t, 128)
    return t if t < n else n


def _layernorm_channels(x3, weight, bias):
    """Normalize x3 of shape (B, C, N) over the C axis. bias=None -> BiasFree semantics."""
    B, C, N = x3.shape
    tn = _pick_tile_n(N, C, x3.dtype.itemsize, B)
    grid = (B, pl.cdiv(N, tn))                       # ragged tail: padded reads, masked writes

    w2 = weight.reshape(C, 1)
    in_specs = [pl.BlockSpec((None, C, tn), lambda b, j: (b, 0, j)),
                pl.BlockSpec((C, 1), lambda b, j: (0, 0))]   # constant map: fetched once
    args = [x3, w2]
    if bias is not None:
        in_specs.append(pl.BlockSpec((C, 1), lambda b, j: (0, 0)))
        args.append(bias.reshape(C, 1))

    return pl.pallas_call(
        _make_kernel(C, with_bias=bias is not None),
        out_shape=jax.ShapeDtypeStruct((B, C, N), x3.dtype),
        grid_spec=pltpu.PrefetchScalarGridSpec(
            num_scalar_prefetch=0,
            grid=grid,
            in_specs=in_specs,
            out_specs=pl.BlockSpec((None, C, tn), lambda b, j: (b, 0, j)),
        ),
        compiler_params=pltpu.CompilerParams(
            dimension_semantics=("parallel", "parallel"),
            vmem_limit_bytes=32 * 1024 * 1024,       # safe on v5e/v6e/v7x; usage << limit
        ),
    )(*args)


@jax.jit
def layer_norm_bchw(x, weight, bias=None):
    """LayerNorm(dim, type).forward on (B, C, H, W). bias=None -> 'BiasFree' type.

    Fully fused: to_3d/to_4d become free reshapes of the contiguous (B, C, H*W) view,
    so the module costs exactly one HBM read + one HBM write."""
    B, C, H, W = x.shape
    x3 = x.reshape(B, C, H * W)                      # contiguous view, no transpose, no copy
    y3 = _layernorm_channels(x3, weight, bias)
    return y3.reshape(B, C, H, W)


def _layernorm_lastdim(x, weight, bias):
    """Standalone BiasFree_/WithBias_LayerNorm on (..., C) (PyTorch's b (h w) c layout).

    This layout needs one transpose in/out to put C on the sublane axis; inside the full
    LayerNorm module use layer_norm_bchw, which needs no transpose at all."""
    shape = x.shape
    C = shape[-1]
    x3 = jnp.swapaxes(x.reshape(1, -1, C), 1, 2)     # (1, C, R)
    y3 = _layernorm_channels(x3, weight, bias)
    return jnp.swapaxes(y3, 1, 2).reshape(shape)


@jax.jit
def biasfree_layernorm(x, weight):
    """BiasFree_LayerNorm.forward: x (..., C), weight (C,)."""
    return _layernorm_lastdim(x, weight, None)


@jax.jit
def withbias_layernorm(x, weight, bias):
    """WithBias_LayerNorm.forward: x (..., C), weight (C,), bias (C,)."""
    return _layernorm_lastdim(x, weight, bias)


# ----------------------------- pure-JAX references -----------------------------
def _ref_lastdim(x, weight, bias):
    xf = x.astype(jnp.float32)
    mu = jnp.mean(xf, axis=-1, keepdims=True)
    var = jnp.mean((xf - mu) ** 2, axis=-1, keepdims=True)   # biased (unbiased=False)
    inv = 1.0 / jnp.sqrt(var + _EPS)
    w = weight.astype(jnp.float32)
    if bias is None:
        out = xf * inv * w
    else:
        out = (xf - mu) * inv * w + bias.astype(jnp.float32)
    return out.astype(x.dtype)


def _ref_bchw(x, weight, bias):
    x3 = jnp.transpose(x, (0, 2, 3, 1))
    return jnp.transpose(_ref_lastdim(x3, weight, bias), (0, 3, 1, 2))


if __name__ == "__main__":
    key = jax.random.PRNGKey(0)
    k1, k2, k3, k4, k5, k6 = jax.random.split(key, 6)

    # Case 1: full module, small shape (B=2, C=4, H=W=16), both BiasFree and WithBias.
    B, C, H, W = 2, 4, 16, 16
    x = jax.random.normal(k1, (B, C, H, W), dtype=jnp.float32)
    w = 1.0 + 0.05 * jax.random.normal(k2, (C,), dtype=jnp.float32)
    b = 0.05 * jax.random.normal(k3, (C,), dtype=jnp.float32)
    out_bf = jax.block_until_ready(layer_norm_bchw(x, w))          # BiasFree
    out_wb = jax.block_until_ready(layer_norm_bchw(x, w, b))       # WithBias
    assert out_bf.shape == x.shape and out_bf.dtype == x.dtype
    assert jnp.allclose(out_bf, _ref_bchw(x, w, None), atol=1e-4, rtol=1e-4)
    assert jnp.allclose(out_wb, _ref_bchw(x, w, b), atol=1e-4, rtol=1e-4)

    # Case 2: C=48, tiny spatial (H*W=35 < 128 -> full-extent lane block), WithBias.
    C2 = 48
    x2 = jax.random.normal(k4, (2, C2, 5, 7), dtype=jnp.float32)
    w2 = 1.0 + 0.05 * jax.random.normal(k5, (C2,), dtype=jnp.float32)
    b2 = 0.05 * jax.random.normal(k6, (C2,), dtype=jnp.float32)
    out2 = jax.block_until_ready(layer_norm_bchw(x2, w2, b2))
    assert jnp.allclose(out2, _ref_bchw(x2, w2, b2), atol=1e-4, rtol=1e-4)

    # Case 3: C=32, H*W=132 (full-extent lane block, not a multiple of 128), BiasFree.
    C3 = 32
    x3 = jax.random.normal(k1, (1, C3, 12, 11), dtype=jnp.float32)
    w3 = 1.0 + 0.05 * jax.random.normal(k2, (C3,), dtype=jnp.float32)
    out3 = jax.block_until_ready(layer_norm_bchw(x3, w3))
    assert jnp.allclose(out3, _ref_bchw(x3, w3, None), atol=1e-4, rtol=1e-4)

    # Case 4: tiled lane axis with a ragged tail (B=1, C=8, H*W=3233 -> 128-multiple tiles).
    C4 = 8
    x4 = jax.random.normal(k3, (1, C4, 61, 53), dtype=jnp.float32)
    w4 = 1.0 + 0.05 * jax.random.normal(k4, (C4,), dtype=jnp.float32)
    b4 = 0.05 * jax.random.normal(k5, (C4,), dtype=jnp.float32)
    out4 = jax.block_until_ready(layer_norm_bchw(x4, w4, b4))
    assert jnp.allclose(out4, _ref_bchw(x4, w4, b4), atol=1e-4, rtol=1e-4)

    # Case 5: bf16 input, tiled lane axis (checks itemsize-aware tiling + dtype round trip).
    C5 = 16
    x5 = jax.random.normal(k6, (2, C5, 32, 32), dtype=jnp.float32).astype(jnp.bfloat16)
    w5 = 1.0 + 0.05 * jax.random.normal(k1, (C5,), dtype=jnp.float32)
    out5 = jax.block_until_ready(layer_norm_bchw(x5, w5))
    ref5 = _ref_bchw(x5, w5, None)
    assert out5.dtype == jnp.bfloat16
    assert jnp.allclose(out5.astype(jnp.float32), ref5.astype(jnp.float32),
                        atol=5e-2, rtol=5e-2)

    # Case 6: standalone WithBias_LayerNorm on a (b, h*w, c) tensor.
    x6 = jax.random.normal(k2, (2, 64, C3), dtype=jnp.float32)
    b6 = 0.05 * jax.random.normal(k3, (C3,), dtype=jnp.float32)
    out6 = jax.block_until_ready(withbias_layernorm(x6, w3, b6))
    assert jnp.allclose(out6, _ref_lastdim(x6, w3, b6), atol=1e-4, rtol=1e-4)

    print("KERNEL_OK")
</pallas_src>

<mosaic_0001>
module attributes {stable_mosaic.version = 11 : i64} {
  func.func @kernel(%arg0: i32, %arg1: i32, %arg2: memref<1x4x256xf32, #tpu.memory_space<vmem>>, %arg3: memref<4x1xf32, #tpu.memory_space<vmem>>, %arg4: memref<1x4x256xf32, #tpu.memory_space<vmem>>) attributes {dimension_semantics = [#tpu.dimension_semantics<parallel>, #tpu.dimension_semantics<parallel>], iteration_bounds = array<i64: 2, 1>, scalar_prefetch = 0 : i64, scratch_operands = 0 : i64, tpu.core_type = #tpu.core_type<tc>, window_params = [{transform_indices = @transform_0, window_bounds = array<i64: 1, 4, 256>}, {pipeline_mode = #tpu.pipeline_mode<synchronous>, transform_indices = @transform_1, window_bounds = array<i64: 4, 1>}, {transform_indices = @transform_2, window_bounds = array<i64: 1, 4, 256>}]} {
    %c0 = arith.constant 0 : index
    %c0_0 = arith.constant 0 : index
    %c0_1 = arith.constant 0 : index
    %0 = vector.load %arg2[%c0, %c0_0, %c0_1] : memref<1x4x256xf32, #tpu.memory_space<vmem>>, vector<1x4x256xf32>
    %1 = vector.shape_cast %0 : vector<1x4x256xf32> to vector<4x256xf32>
    %cst = arith.constant dense<0.000000e+00> : vector<256xf32>
    %2 = vector.multi_reduction <add>, %1, %cst [0] : vector<4x256xf32> to vector<256xf32>
    %3 = vector.shape_cast %2 : vector<256xf32> to vector<1x256xf32>
    %cst_2 = arith.constant 2.500000e-01 : f32
    %4 = vector.broadcast %cst_2 : f32 to vector<1x256xf32>
    %5 = arith.mulf %3, %4 : vector<1x256xf32>
    %6 = vector.broadcast %5 : vector<1x256xf32> to vector<4x256xf32>
    %7 = arith.subf %1, %6 : vector<4x256xf32>
    %8 = arith.mulf %7, %7 : vector<4x256xf32>
    %cst_3 = arith.constant dense<0.000000e+00> : vector<256xf32>
    %9 = vector.multi_reduction <add>, %8, %cst_3 [0] : vector<4x256xf32> to vector<256xf32>
    %10 = vector.shape_cast %9 : vector<256xf32> to vector<1x256xf32>
    %cst_4 = arith.constant 2.500000e-01 : f32
    %11 = vector.broadcast %cst_4 : f32 to vector<1x256xf32>
    %12 = arith.mulf %10, %11 : vector<1x256xf32>
    %cst_5 = arith.constant 9.99999974E-6 : f32
    %13 = vector.broadcast %cst_5 : f32 to vector<1x256xf32>
    %14 = arith.addf %12, %13 : vector<1x256xf32>
    %15 = math.rsqrt %14 : vector<1x256xf32>
    %c0_6 = arith.constant 0 : index
    %c0_7 = arith.constant 0 : index
    %16 = vector.load %arg3[%c0_6, %c0_7] : memref<4x1xf32, #tpu.memory_space<vmem>>, vector<4x1xf32>
    %17 = vector.broadcast %15 : vector<1x256xf32> to vector<4x256xf32>
    %18 = arith.mulf %1, %17 : vector<4x256xf32>
    %19 = vector.broadcast %16 : vector<4x1xf32> to vector<4x256xf32>
    %20 = arith.mulf %18, %19 : vector<4x256xf32>
    %c0_8 = arith.constant 0 : index
    %c0_9 = arith.constant 0 : index
    %c0_10 = arith.constant 0 : index
    %21 = vector.load %arg4[%c0_8, %c0_9, %c0_10] : memref<1x4x256xf32, #tpu.memory_space<vmem>>, vector<1x4x256xf32>
    %22 = vector.shape_cast %21 : vector<1x4x256xf32> to vector<4x256xf32>
    %23 = vector.shape_cast %20 : vector<4x256xf32> to vector<1x4x256xf32>
    tpu.vector_store %arg4[%c0_8, %c0_9, %c0_10], %23 {strides = array<i32>} : memref<1x4x256xf32, #tpu.memory_space<vmem>>, vector<1x4x256xf32>,
    return
  }
  func.func @transform_0(%arg0: i32, %arg1: i32) -> (i32, i32, i32) {
    %c0_i32 = arith.constant 0 : i32
    %c0_i32_0 = arith.constant 0 : i32
    return %arg0, %c0_i32, %arg1 : i32, i32, i32
  }
  func.func @transform_1(%arg0: i32, %arg1: i32) -> (i32, i32) {
    %c0_i32 = arith.constant 0 : i32
    %c0_i32_0 = arith.constant 0 : i32
    %c0_i32_1 = arith.constant 0 : i32
    return %c0_i32, %c0_i32_0 : i32, i32
  }
  func.func @transform_2(%arg0: i32, %arg1: i32) -> (i32, i32, i32) {
    %c0_i32 = arith.constant 0 : i32
    %c0_i32_0 = arith.constant 0 : i32
    return %arg0, %c0_i32, %arg1 : i32, i32, i32
  }
}

</mosaic_0001>

<bundles_post_ra>
// kernel: layer_norm_bchw.1
= control target key start
LH: loop header
LB: loop body
LE: loop exit
PB: predicated region body
PF: predicated region fallthrough
CT: control target
= control target key end

     0   :  { %s426_s9 = smov 0   ;;  %s428_s10 = smov 0   ;;  %s473_s0 = inlined_call_operand.vmem [shape: f32[2,4,256], index: 0, kind: input, shape index: {}]   ;;  %s474_s1 = inlined_call_operand.vmem [shape: f32[4,1], index: 1, kind: input, shape index: {}]   ;;  %s475_s2 = inlined_call_operand.vmem [shape: f32[2,4,256], index: 2, kind: output, shape index: {}]  }
   0x1   :  { %s430_s11 = smov 0  }
   0x2 LB: > { %s24_s12 = sadd.s32 1, %s403_s10  ;;  %p344_p0 = scmp.ge.s32.totalorder %s407_s11, 1  ;;  %s407_s11 = sphi %s430_s11, %s12_s11   ;;  %s403_s10 = sphi %s428_s10, %s477_s10   ;;  %s399_s9 = sphi %s426_s9, %s476_s9  }
   0x3   : > { %p26_p1 = scmp.ge.s32.totalorder %s24_s12, 2  ;;  %p133_p2 = scmp.lt.s32.totalorder %s407_s11, 3 }
   0x5   : > { %s479_s12 = smov (%p26_p1, %s24_s12), 0  ;;  %p134_p3 = pnand %p344_p0, %p133_p2 }
   0x6   : > { %v233_v0 = vld [vmem:[%s474_s1] sm:$0xf] (!%p134_p3)  ;;  %v409_v1 = vmov (!%p134_p3), 0   ;;  %p164_p4 = scmp.lt.s32.totalorder (!%p134_p3), %s399_s9, 1  ;;  %vm187_vm0 = vcmask (!%p134_p3), 1043456   ;;  %v246_v44 = vlaneseq (!%p134_p3) }
   0x7   : > { %137 = sbr.rel (%p134_p3) target bundleno = 141 (0x8d), region = 28  ;;  %379 = vset.pattern.permute.xlu0 (!%p134_p3), %v409_v1  ;;  %v410_v42 = vmov (!%p134_p3), 839922192  }
   0x8   : > { %241 = vperm.xlu0 (!%p134_p3), %379, %v233_v0   ;;  %v244_v43 = vunpack.c.l.s4 (!%p134_p3), %v410_v42  ;;  %v247_v48 = vshrl.u32 (!%p134_p3), %v246_v44, 7 }
   0xa   : > { %v245_v47 = vunpack.c.0.s8 (!%p134_p3), %v244_v43 }
   0xc   : > { %v248_v50 = vsub.s32 (!%p134_p3), %v245_v47, %v247_v48 }
   0xe   : > { %s481_s9 = smov (!%p164_p4, %s399_s9), 1 }
   0xf   : > { %s351_s15 = sshll.u32 %s481_s9, 3 }
  0x10   : > { %s171_s18 = scalar_lea.vmem %s473_s0, %s351_s15  ;;  %s181_s21 = scalar_lea.vmem %s475_s2, %s351_s15 }
  0x11   : > { %v183_v2 = vld [vmem:[%s171_s18] sm:$0xff] }
  0x12   : > { %v185_v3 = vcombine.high %v183_v2, %v183_v2  ;;  %v188_v4 = vsel %vm187_vm0, %v183_v2, 0.0 }
  0x13   : > { %v189_v6 = vrot.slane %v188_v4, 4 }
  0x14   : > { %v195_v5 = vsel %vm187_vm0, %v185_v3, 0.0 }
  0x15   : > { %v196_v7 = vrot.slane %v195_v5, 4  ;;  %v190_v8 = vadd.f32 %v189_v6, %v188_v4 }
  0x17   : > { %v197_v9 = vadd.f32 %v196_v7, %v195_v5  ;;  %v191_v10 = vrot.slane %v190_v8, 2 }
  0x19   : > { %v198_v11 = vrot.slane %v197_v9, 2  ;;  %v192_v12 = vadd.f32 %v191_v10, %v190_v8 }
  0x1b   : > { %v199_v13 = vadd.f32 %v198_v11, %v197_v9  ;;  %v193_v14 = vrot.slane %v192_v12, 1 }
  0x1d   : > { %v200_v15 = vrot.slane %v199_v13, 1  ;;  %v194_v16 = vadd.f32 %v193_v14, %v192_v12 }
  0x1f   : > { %v201_v17 = vadd.f32 %v200_v15, %v199_v13  ;;  %v202_v18 = vmul.f32 0.25, %v194_v16 }
  0x21   : > { %v203_v19 = vmul.f32 0.25, %v201_v17 }
  0x23   : > { %v206_v20 = vcombine.low %v202_v18, %v203_v19 }
  0x25   : > { %v208_v21 = vsub.f32 %v183_v2, %v206_v20 }
  0x27   : > { %v209_v22 = vmul.f32 %v208_v21, %v208_v21 }
  0x29   : > { %v211_v23 = vcombine.high %v209_v22, %v209_v22  ;;  %v213_v24 = vsel %vm187_vm0, %v209_v22, 0.0 }
  0x2a   : > { %v214_v26 = vrot.slane %v213_v24, 4 }
  0x2b   : > { %v220_v25 = vsel %vm187_vm0, %v211_v23, 0.0 }
  0x2c   : > { %v221_v27 = vrot.slane %v220_v25, 4  ;;  %v215_v28 = vadd.f32 %v214_v26, %v213_v24 }
  0x2e   : > { %v222_v29 = vadd.f32 %v221_v27, %v220_v25  ;;  %v216_v30 = vrot.slane %v215_v28, 2 }
  0x30   : > { %v223_v31 = vrot.slane %v222_v29, 2  ;;  %v217_v32 = vadd.f32 %v216_v30, %v215_v28 }
  0x32   : > { %v224_v33 = vadd.f32 %v223_v31, %v222_v29  ;;  %v218_v34 = vrot.slane %v217_v32, 1 }
  0x34   : > { %v225_v35 = vrot.slane %v224_v33, 1  ;;  %v219_v36 = vadd.f32 %v218_v34, %v217_v32 }
  0x36   : > { %v226_v37 = vadd.f32 %v225_v35, %v224_v33  ;;  %v227_v38 = vmul.f32 0.25, %v219_v36 }
  0x38   : > { %v228_v39 = vmul.f32 0.25, %v226_v37  ;;  %v229_v40 = vadd.f32 1e-05, %v227_v38 }
  0x3a   : > { %v230_v41 = vadd.f32 1e-05, %v228_v39  ;;  %381 = vrsqrt.f32 %v229_v40 }
  0x3c   : > { %383 = vrsqrt.f32 %v230_v41 }
  0x44   : > { %v382_v45 = vpop.eup %381 }
  0x46   : > { %v384_v46 = vpop.eup %383 }
  0x47   : > { %v236_v49 = vcombine.low %v382_v45, %v384_v46 }
  0x49   : > { %v238_v51 = vmul.f32 %v236_v49, %v183_v2 }
  0x87   : > { %v242_v52 = vpop.permute.xlu0 %241 }
  0x88   : > { %v249_v53 = vrot.slane %v242_v52, %v248_v50 }
  0x8a   : > { %v251_v54 = vmul.f32 %v249_v53, %v238_v51 }
  0x8c   : > { %252 = vst [vmem:[%s181_s21] sm:$0xff] %v251_v54 }
  0x8d PF: > { %s12_s11 = sadd.s32 1, %s407_s11   ;;  %s476_s9 = smov %s403_s10 }
  0x8e   : > { %p9_p5 = scmp.ge.s32.totalorder %s12_s11, 4   ;;  %s477_s10 = smov %s479_s12 }
  0x90   :  { %11 = sbr.rel (!%p9_p5) target bundleno = 2 (0x2), region = 58 }

</bundles_post_ra>
